<compile_context>
chip_gen: v7x
topology: tpu7x:2x2x1
jax: 0.10.0
libtpu: 0.0.40
codegen_flags: <defaults>
</compile_context>

<pallas_src>
import functools
import math

import jax
import jax.numpy as jnp
from jax.experimental import pallas as pl
from jax.experimental.pallas import tpu as pltpu


LANE = 128  # lane granularity; batch sits on the lane axis


def _round_up(n, m):
    return ((n + m - 1) // m) * m


def _pick_tile(b_pad, tile_b):
    """Largest multiple of 128 that divides b_pad, is <= tile_b, and leaves
    >=2 grid steps when possible (v7x megacore)."""
    max_tile = min(int(tile_b), b_pad)
    if b_pad >= 2 * LANE:
        max_tile = min(max_tile, b_pad // 2)
    max_tile = max(LANE, (max_tile // LANE) * LANE)
    best = LANE
    t = LANE
    while t <= max_tile:
        if b_pad % t == 0:
            best = t
        t += LANE
    return best


def _dist_int_critic_kernel(x_ref, w1t_ref, b1_ref, w2t_ref, b2_ref,
                            w3_ref, b3_ref, out_ref, *,
                            log_gamma, neg_inv_one_minus_gamma, compute_dtype):
    # Layer 1: (H, D) @ (D, tile) -> (H, tile); batch on the lane axis.
    h = jnp.dot(w1t_ref[...], x_ref[...], preferred_element_type=jnp.float32)
    h = jnp.maximum(h + b1_ref[...], 0.0)
    # Layer 2: (H, H) @ (H, tile) -> (H, tile).
    h = jnp.dot(w2t_ref[...], h.astype(compute_dtype),
                preferred_element_type=jnp.float32)
    h = jnp.maximum(h + b2_ref[...], 0.0)
    # Head (out_features == 1): f32 VPU multiply + 32-sublane reduce -> (1, tile).
    dist = jnp.sum(h * w3_ref[...], axis=0, keepdims=True) + b3_ref[...]
    # DistIntCritic transform, lane-dense: -(1 - gamma**dist) / (1 - gamma).
    out_ref[...] = neg_inv_one_minus_gamma * (1.0 - jnp.exp(dist * log_gamma))


def dist_int_critic(x, params, gamma, *, tile_b=4096,
                    compute_dtype=jnp.bfloat16):
    """x: (B, input_dim) float32. Returns (B,) float32 (q_values.squeeze())."""
    w1, b1, w2, b2, w3, b3 = params
    B, D = x.shape
    H = w1.shape[1]
    assert 0.0 < float(gamma) < 1.0, "gamma must be in (0, 1)"

    # Pad the batch only to lane granularity (128), then pick a tile that
    # divides the padded batch — no full-tile padding waste on the last step.
    B_pad = _round_up(B, LANE)
    if B_pad != B:
        x = jnp.pad(x, ((0, B_pad - B), (0, 0)))
    tile = _pick_tile(B_pad, tile_b)

    # Transposed, lane-dense operands.  One cheap XLA transpose in the wrapper.
    x_t = x.astype(compute_dtype).T                    # (D, B_pad)
    w1t = w1.T.astype(compute_dtype)                   # (H, D)
    w2t = w2.T.astype(compute_dtype)                   # (H, H)
    b1_c = b1.reshape(H, 1).astype(jnp.float32)        # (H, 1): sublane bias
    b2_c = b2.reshape(H, 1).astype(jnp.float32)
    w3_c = w3.reshape(H, 1).astype(jnp.float32)        # head weights, f32
    b3_c = b3.reshape(1, 1).astype(jnp.float32)

    kernel = functools.partial(
        _dist_int_critic_kernel,
        log_gamma=math.log(float(gamma)),
        neg_inv_one_minus_gamma=-1.0 / (1.0 - float(gamma)),
        compute_dtype=compute_dtype)

    out = pl.pallas_call(
        kernel,
        out_shape=jax.ShapeDtypeStruct((1, B_pad), jnp.float32),
        grid_spec=pltpu.PrefetchScalarGridSpec(
            num_scalar_prefetch=0,
            grid=(B_pad // tile,),
            in_specs=[
                pl.BlockSpec((D, tile), lambda i: (0, i)),   # x^T tile (streamed)
                pl.BlockSpec((H, D), lambda i: (0, 0)),      # W1^T (resident)
                pl.BlockSpec((H, 1), lambda i: (0, 0)),      # b1
                pl.BlockSpec((H, H), lambda i: (0, 0)),      # W2^T (resident)
                pl.BlockSpec((H, 1), lambda i: (0, 0)),      # b2
                pl.BlockSpec((H, 1), lambda i: (0, 0)),      # w3 column
                pl.BlockSpec((1, 1), lambda i: (0, 0)),      # b3
            ],
            out_specs=pl.BlockSpec((1, tile), lambda i: (0, i)),   # lane-dense
        ),
        compiler_params=pltpu.CompilerParams(
            dimension_semantics=("parallel",)),
    )(x_t, w1t, b1_c, w2t, b2_c, w3_c, b3_c)
    return out[0, :B]   # .squeeze()


def _init_params(key, input_dim, hid_size, n_hids):
    """Deterministic PyTorch-Linear-style init: U(-1/sqrt(fan_in), 1/sqrt(fan_in))."""
    sizes = [input_dim] + [hid_size] * n_hids + [1]
    params = []
    for i in range(len(sizes) - 1):
        fan_in, fan_out = sizes[i], sizes[i + 1]
        key, kw, kb = jax.random.split(key, 3)
        bound = 1.0 / jnp.sqrt(jnp.float32(fan_in))
        w = jax.random.uniform(kw, (fan_in, fan_out), jnp.float32, -bound, bound)
        b = jax.random.uniform(kb, (1, fan_out), jnp.float32, -bound, bound)
        params += [w, b]
    return tuple(params)


def _reference(x, params, gamma, compute_dtype=jnp.float32):
    """Pure-JAX reference; compute_dtype mirrors the kernel's MXU operand dtype."""
    w1, b1, w2, b2, w3, b3 = params
    c = lambda a: a.astype(compute_dtype).astype(jnp.float32)
    h = jnp.maximum(c(x) @ c(w1) + b1.reshape(1, -1), 0.0)
    h = jnp.maximum(c(h) @ c(w2) + b2.reshape(1, -1), 0.0)
    dist = (h @ w3 + b3.reshape(1, -1))[:, 0]
    return -(1.0 - jnp.exp(dist * jnp.log(gamma))) / (1.0 - gamma)


if __name__ == "__main__":
    # env_params['obs'] = 24, env_params['sub_goal'] = 8 -> input_dim = 32
    # args.hid_size = 32, args.n_hids = 2, args.activ = ReLU, args.gamma = 0.98
    batch, obs_dim, goal_dim, hid_size, n_hids = 8, 24, 8, 32, 2
    gamma = 0.98
    input_dim = obs_dim + goal_dim

    key = jax.random.PRNGKey(0)
    key, kx = jax.random.split(key)
    x = jax.random.normal(kx, (batch, input_dim), jnp.float32)
    params = _init_params(key, input_dim, hid_size, n_hids)

    out = jax.block_until_ready(dist_int_critic(x, params, gamma))

    # Reference with the same bf16 MXU-operand rounding (tight tolerance) plus
    # a loose sanity check against the pure-f32 forward pass.
    ref_matched = _reference(x, params, jnp.float32(gamma),
                             compute_dtype=jnp.bfloat16)
    ref_f32 = _reference(x, params, jnp.float32(gamma))
    assert out.shape == (batch,)
    assert jnp.allclose(out, ref_matched, atol=1e-3, rtol=1e-3), \
        float(jnp.max(jnp.abs(out - ref_matched)))
    assert jnp.allclose(out, ref_f32, atol=1e-1, rtol=1e-1), \
        float(jnp.max(jnp.abs(out - ref_f32)))
    print("KERNEL_OK")
</pallas_src>

<mosaic_0001>
module attributes {stable_mosaic.version = 11 : i64} {
  func.func @_dist_int_critic_kernel(%arg0: i32, %arg1: memref<32x128xbf16, #tpu.memory_space<vmem>>, %arg2: memref<32x32xbf16, #tpu.memory_space<vmem>>, %arg3: memref<32x1xf32, #tpu.memory_space<vmem>>, %arg4: memref<32x32xbf16, #tpu.memory_space<vmem>>, %arg5: memref<32x1xf32, #tpu.memory_space<vmem>>, %arg6: memref<32x1xf32, #tpu.memory_space<vmem>>, %arg7: memref<1x1xf32, #tpu.memory_space<vmem>>, %arg8: memref<1x128xf32, #tpu.memory_space<vmem>>) attributes {dimension_semantics = [#tpu.dimension_semantics<parallel>], iteration_bounds = array<i64: 1>, scalar_prefetch = 0 : i64, scratch_operands = 0 : i64, tpu.core_type = #tpu.core_type<tc>, window_params = [{transform_indices = @transform_0, window_bounds = array<i64: 32, 128>}, {pipeline_mode = #tpu.pipeline_mode<synchronous>, transform_indices = @transform_1, window_bounds = array<i64: 32, 32>}, {pipeline_mode = #tpu.pipeline_mode<synchronous>, transform_indices = @transform_2, window_bounds = array<i64: 32, 1>}, {pipeline_mode = #tpu.pipeline_mode<synchronous>, transform_indices = @transform_3, window_bounds = array<i64: 32, 32>}, {pipeline_mode = #tpu.pipeline_mode<synchronous>, transform_indices = @transform_4, window_bounds = array<i64: 32, 1>}, {pipeline_mode = #tpu.pipeline_mode<synchronous>, transform_indices = @transform_5, window_bounds = array<i64: 32, 1>}, {pipeline_mode = #tpu.pipeline_mode<synchronous>, transform_indices = @transform_6, window_bounds = array<i64: 1, 1>}, {transform_indices = @transform_7, window_bounds = array<i64: 1, 128>}]} {
    %c0 = arith.constant 0 : index
    %c0_0 = arith.constant 0 : index
    %0 = vector.load %arg2[%c0, %c0_0] : memref<32x32xbf16, #tpu.memory_space<vmem>>, vector<32x32xbf16>
    %c0_1 = arith.constant 0 : index
    %c0_2 = arith.constant 0 : index
    %1 = vector.load %arg1[%c0_1, %c0_2] : memref<32x128xbf16, #tpu.memory_space<vmem>>, vector<32x128xbf16>
    %cst = arith.constant dense<0.000000e+00> : vector<32x128xf32>
    %2 = tpu.matmul %0, %1, %cst {dimension_numbers = #tpu.dot_dimension_numbers<[1], [0], [0], [1], [0, 0, 1, 1], [], []>} : vector<32x32xbf16>, vector<32x128xbf16>, vector<32x128xf32> -> vector<32x128xf32>
    %c0_3 = arith.constant 0 : index
    %c0_4 = arith.constant 0 : index
    %3 = vector.load %arg3[%c0_3, %c0_4] : memref<32x1xf32, #tpu.memory_space<vmem>>, vector<32x1xf32>
    %4 = vector.broadcast %3 : vector<32x1xf32> to vector<32x128xf32>
    %5 = arith.addf %2, %4 : vector<32x128xf32>
    %cst_5 = arith.constant 0.000000e+00 : f32
    %6 = vector.broadcast %cst_5 : f32 to vector<32x128xf32>
    %7 = arith.maximumf %5, %6 : vector<32x128xf32>
    %c0_6 = arith.constant 0 : index
    %c0_7 = arith.constant 0 : index
    %8 = vector.load %arg4[%c0_6, %c0_7] : memref<32x32xbf16, #tpu.memory_space<vmem>>, vector<32x32xbf16>
    %9 = arith.truncf %7 : vector<32x128xf32> to vector<32x128xbf16>
    %cst_8 = arith.constant dense<0.000000e+00> : vector<32x128xf32>
    %10 = tpu.matmul %8, %9, %cst_8 {dimension_numbers = #tpu.dot_dimension_numbers<[1], [0], [0], [1], [0, 0, 1, 1], [], []>} : vector<32x32xbf16>, vector<32x128xbf16>, vector<32x128xf32> -> vector<32x128xf32>
    %c0_9 = arith.constant 0 : index
    %c0_10 = arith.constant 0 : index
    %11 = vector.load %arg5[%c0_9, %c0_10] : memref<32x1xf32, #tpu.memory_space<vmem>>, vector<32x1xf32>
    %12 = vector.broadcast %11 : vector<32x1xf32> to vector<32x128xf32>
    %13 = arith.addf %10, %12 : vector<32x128xf32>
    %cst_11 = arith.constant 0.000000e+00 : f32
    %14 = vector.broadcast %cst_11 : f32 to vector<32x128xf32>
    %15 = arith.maximumf %13, %14 : vector<32x128xf32>
    %c0_12 = arith.constant 0 : index
    %c0_13 = arith.constant 0 : index
    %16 = vector.load %arg6[%c0_12, %c0_13] : memref<32x1xf32, #tpu.memory_space<vmem>>, vector<32x1xf32>
    %17 = vector.broadcast %16 : vector<32x1xf32> to vector<32x128xf32>
    %18 = arith.mulf %15, %17 : vector<32x128xf32>
    %cst_14 = arith.constant dense<0.000000e+00> : vector<128xf32>
    %19 = vector.multi_reduction <add>, %18, %cst_14 [0] : vector<32x128xf32> to vector<128xf32>
    %20 = vector.shape_cast %19 : vector<128xf32> to vector<1x128xf32>
    %c0_15 = arith.constant 0 : index
    %c0_16 = arith.constant 0 : index
    %21 = vector.load %arg7[%c0_15, %c0_16] : memref<1x1xf32, #tpu.memory_space<vmem>>, vector<1x1xf32>
    %22 = vector.broadcast %21 : vector<1x1xf32> to vector<1x128xf32>
    %23 = arith.addf %20, %22 : vector<1x128xf32>
    %cst_17 = arith.constant -0.0202027075 : f32
    %24 = vector.broadcast %cst_17 : f32 to vector<1x128xf32>
    %25 = arith.mulf %23, %24 : vector<1x128xf32>
    %26 = math.exp %25 : vector<1x128xf32>
    %cst_18 = arith.constant 1.000000e+00 : f32
    %27 = vector.broadcast %cst_18 : f32 to vector<1x128xf32>
    %28 = arith.subf %27, %26 : vector<1x128xf32>
    %cst_19 = arith.constant -5.000000e+01 : f32
    %29 = vector.broadcast %cst_19 : f32 to vector<1x128xf32>
    %30 = arith.mulf %29, %28 : vector<1x128xf32>
    %c0_20 = arith.constant 0 : index
    %c0_21 = arith.constant 0 : index
    %31 = vector.load %arg8[%c0_20, %c0_21] : memref<1x128xf32, #tpu.memory_space<vmem>>, vector<1x128xf32>
    tpu.vector_store %arg8[%c0_20, %c0_21], %30 {strides = array<i32>} : memref<1x128xf32, #tpu.memory_space<vmem>>, vector<1x128xf32>,
    return
  }
  func.func @transform_0(%arg0: i32) -> (i32, i32) {
    %c0_i32 = arith.constant 0 : i32
    %c0_i32_0 = arith.constant 0 : i32
    return %c0_i32, %arg0 : i32, i32
  }
  func.func @transform_1(%arg0: i32) -> (i32, i32) {
    %c0_i32 = arith.constant 0 : i32
    %c0_i32_0 = arith.constant 0 : i32
    %c0_i32_1 = arith.constant 0 : i32
    return %c0_i32, %c0_i32_0 : i32, i32
  }
  func.func @transform_2(%arg0: i32) -> (i32, i32) {
    %c0_i32 = arith.constant 0 : i32
    %c0_i32_0 = arith.constant 0 : i32
    %c0_i32_1 = arith.constant 0 : i32
    return %c0_i32, %c0_i32_0 : i32, i32
  }
  func.func @transform_3(%arg0: i32) -> (i32, i32) {
    %c0_i32 = arith.constant 0 : i32
    %c0_i32_0 = arith.constant 0 : i32
    %c0_i32_1 = arith.constant 0 : i32
    return %c0_i32, %c0_i32_0 : i32, i32
  }
  func.func @transform_4(%arg0: i32) -> (i32, i32) {
    %c0_i32 = arith.constant 0 : i32
    %c0_i32_0 = arith.constant 0 : i32
    %c0_i32_1 = arith.constant 0 : i32
    return %c0_i32, %c0_i32_0 : i32, i32
  }
  func.func @transform_5(%arg0: i32) -> (i32, i32) {
    %c0_i32 = arith.constant 0 : i32
    %c0_i32_0 = arith.constant 0 : i32
    %c0_i32_1 = arith.constant 0 : i32
    return %c0_i32, %c0_i32_0 : i32, i32
  }
  func.func @transform_6(%arg0: i32) -> (i32, i32) {
    %c0_i32 = arith.constant 0 : i32
    %c0_i32_0 = arith.constant 0 : i32
    %c0_i32_1 = arith.constant 0 : i32
    return %c0_i32, %c0_i32_0 : i32, i32
  }
  func.func @transform_7(%arg0: i32) -> (i32, i32) {
    %c0_i32 = arith.constant 0 : i32
    %c0_i32_0 = arith.constant 0 : i32
    return %c0_i32, %arg0 : i32, i32
  }
}

</mosaic_0001>

<bundles_post_ra>
// kernel: tpu_custom_call.1
= control target key start
LH: loop header
LB: loop body
LE: loop exit
PB: predicated region body
PF: predicated region fallthrough
CT: control target
= control target key end

     0   :  { %s496_s0 = inlined_call_operand.vmem [shape: bf16[32,128], index: 0, kind: input, shape index: {}]   ;;  %s497_s1 = inlined_call_operand.vmem [shape: bf16[32,32], index: 1, kind: input, shape index: {}]   ;;  %s498_s2 = inlined_call_operand.vmem [shape: f32[32,1], index: 2, kind: input, shape index: {}]   ;;  %s499_s3 = inlined_call_operand.vmem [shape: bf16[32,32], index: 3, kind: input, shape index: {}]   ;;  %s500_s4 = inlined_call_operand.vmem [shape: f32[32,1], index: 4, kind: input, shape index: {}]   ;;  %s501_s5 = inlined_call_operand.vmem [shape: f32[32,1], index: 5, kind: input, shape index: {}]   ;;  %s502_s6 = inlined_call_operand.<no memory space> [shape: f32[1,1], index: 6, kind: input, shape index: {}]   ;;  %s503_s7 = inlined_call_operand.hbm [shape: f32[1,128], index: 7, kind: output, shape index: {}]  }
   0x1   :  { %v12_v0 = vstv %s502_s6 }
   0x2   :  { %13 = vst [vmem:[#allocation2] sm:$0x1] %v12_v0 }
   0x3   :  { %v349_v1 = vld [vmem:[%s496_s0] sm:$0xff]   ;;  %vm84_vm0 = vcmask 261120   ;;  %v350_v2 = vld [vmem:[%s496_s0 + $0x8] sm:$0xff]   ;;  %v381_v4 = vmov 0   ;;  %v40_v6 = vld [vmem:[%s498_s2 + $0x10] sm:$0xff] }
   0x4   :  { %329 = vmatprep.subr.bf16.mxu0 %v349_v1  ;;  %v351_v3 = vld [vmem:[%s497_s1] sm:$0xff]   ;;  %347 = vset.pattern.permute.xlu0 %v381_v4  ;;  %v352_v7 = vld [vmem:[%s497_s1 + $0x8] sm:$0xff]   ;;  %v41_v9 = vld [vmem:[%s498_s2 + $0x18] sm:$0xff] }
   0x5   :  { %330 = vmatpush3.bf16.msra.mxu0 %v349_v1  ;;  %348 = vset.pattern.permute.xlu1 %v381_v4  ;;  %v38_v5 = vld [vmem:[%s498_s2] sm:$0xff]  ;;  %v39_v8 = vld [vmem:[%s498_s2 + $0x8] sm:$0xff] }
   0x6   :  { %331 = vmatprep.subr.bf16.mxu0 %v350_v2  ;;  %333 = vmatprep.mubr.msk.bf16.mxu0 %vm84_vm0, %v351_v3 }
   0x7   :  { %44 = vperm.xlu0 %347, %v38_v5   ;;  %54 = vperm.xlu1 %348, %v40_v6  }
   0x9   :  { %332 = vmatpush3.bf16.msra.mxu0 %v350_v2 }
   0xb   :  { %49 = vperm.xlu0 %347, %v39_v8   ;;  %59 = vperm.xlu1 %348, %v41_v9  }
   0xc   :  { %14 = vsyncpa [#allocation4], 0  ;;  %334 = vmatmul.mubr.msk.bf16.vlgmr.msra.gmra.mrb[0].mxu0 %vm84_vm0, %v352_v7  ;;  %v150_v10 = vld [vmem:[%s500_s4] sm:$0xff]  ;;  %v151_v11 = vld [vmem:[%s500_s4 + $0x8] sm:$0xff]  ;;  %v286_v1 = vlaneseq }
   0xd   :  { %v152_v12 = vld [vmem:[%s500_s4 + $0x10] sm:$0xff]  ;;  %v153_v13 = vld [vmem:[%s500_s4 + $0x18] sm:$0xff]  ;;  %v243_v14 = vld [vmem:[%s501_s5] sm:$0xff] }
   0xe   :  { %v244_v15 = vld [vmem:[%s501_s5 + $0x8] sm:$0xff]  ;;  %v245_v16 = vld [vmem:[%s501_s5 + $0x10] sm:$0xff]  ;;  %v246_v17 = vld [vmem:[%s501_s5 + $0x18] sm:$0xff]  ;;  %v287_v4 = vshrl.u32 %v286_v1, 7 }
   0xf   :  { %156 = vperm.xlu0 %347, %v150_v10   ;;  %161 = vperm.xlu1 %348, %v151_v11   ;;  %v280_v18 = vld [vmem:[#allocation2] sm:$0x1]  ;;  %v354_v38 = vld [vmem:[%s499_s3 + $0x8] sm:$0xff]  }
  0x10   :  { %v353_v19 = vld [vmem:[%s499_s3] sm:$0xff]   ;;  %v288_v7 = vsub.s32 0, %v287_v4  ;;  %s382_s3 = smov [#allocation3]  }
  0x11   :  { %341 = vmatprep.mubr.msk.bf16.mxu1 %vm84_vm0, %v353_v19  ;;  %s303_s9 = sshll.u32 %s382_s3, 4  ;;  %s304_s9 = int_to_ptr.vmem [resolvable:$true] %s303_s9 }
  0x12   :  { %s357_s10 = scalar_lea.vmem %s304_s9, 16  ;;  %s361_s11 = scalar_lea.vmem %s304_s9, 32 }
  0x13   :  { %166 = vperm.xlu0 %347, %v152_v12   ;;  %171 = vperm.xlu1 %348, %v153_v13   ;;  %p358_p0 = scmp.ne.s32.totalorder %s304_s9, %s357_s10  ;;  %p362_p1 = scmp.lt.s32.totalorder %s304_s9, %s304_s9 }
  0x14   :  { %p363_p2 = scmp.lt.s32.totalorder %s361_s11, %s357_s10 }
  0x16   :  { %p364_p3 = por %p363_p2, %p362_p1 }
  0x17   :  { %249 = vperm.xlu0 %347, %v243_v14   ;;  %254 = vperm.xlu1 %348, %v244_v15  }
  0x18   :  { %p365_p4 = pnand %p364_p3, %p358_p0 }
  0x1b   :  { %259 = vperm.xlu0 %347, %v245_v16   ;;  %264 = vperm.xlu1 %348, %v246_v17  }
  0x1f   :  { %283 = vperm.xlu0 %347, %v280_v18  }
  0x86   :  { %v55_v20 = vpop.permute.xlu1 %54  ;;  %v45_v21 = vpop.permute.xlu0 %44 }
  0x8a   :  { %v60_v25 = vpop.permute.xlu1 %59  ;;  %v50_v28 = vpop.permute.xlu0 %49 }
  0x8e   :  { %v157_v39 = vpop.permute.xlu0 %156  ;;  %v162_v40 = vpop.permute.xlu1 %161 }
  0x92   :  { %v167_v41 = vpop.permute.xlu0 %166  ;;  %v172_v42 = vpop.permute.xlu1 %171 }
  0x96   :  { %v250_v48 = vpop.permute.xlu0 %249  ;;  %v255_v53 = vpop.permute.xlu1 %254 }
  0x9a   :  { %v260_v59 = vpop.permute.xlu0 %259  ;;  %v265_v62 = vpop.permute.xlu1 %264 }
  0x9e   :  { %v284_v9 = vpop.permute.xlu0 %283 }
  0x9f   :  { %v289_v11 = vrot.slane %v284_v9, %v288_v7 }
  0xdf   :  { %v335_v22 = vpop.f32.mrb[0].mxu0 }
  0xe0   :  { %v134_v23 = vadd.f32 %v335_v22, %v55_v20  ;;  %v125_v24 = vpop.f32.mrb[1].mxu0 }
  0xe1   :  { %v126_v26 = vadd.f32 %v125_v24, %v45_v21  ;;  %v336_v27 = vpop.f32.mrb[2].mxu0 }
  0xe2   :  { %v137_v29 = vadd.f32 %v336_v27, %v60_v25  ;;  %v128_v30 = vpop.f32.mrb[3].mxu0  ;;  %v142_v32 = vmax.f32 %v134_v23, 0.0 }
  0xe3   :  { %v129_v31 = vadd.f32 %v128_v30, %v50_v28  ;;  %v140_v34 = vmax.f32 %v126_v26, 0.0 }
  0xe4   :  { %v143_v33 = vmax.f32 %v137_v29, 0.0 }
  0xe5   :  { %v141_v35 = vmax.f32 %v129_v31, 0.0 }
  0xe6   :  { %v149_v36 = vpack.c.bf16 %v143_v33, %v142_v32 }
  0xe7   :  { %v148_v37 = vpack.c.bf16 %v141_v35, %v140_v34 }
  0xe9   :  { %337 = vmatprep.subr.bf16.mxu1 %v148_v37 }
  0xea   :  { %338 = vmatpush3.bf16.msra.mxu1 %v148_v37 }
  0xeb   :  { %339 = vmatprep.subr.bf16.mxu1 %v149_v36 }
  0xee   :  { %340 = vmatpush3.bf16.msra.mxu1 %v149_v36 }
  0xf1   :  { %342 = vmatmul.mubr.msk.bf16.vlgmr.msra.gmra.mrb[0].mxu1 %vm84_vm0, %v354_v38 }
 0x1c4   :  { %v343_v43 = vpop.f32.mrb[0].mxu1 }
 0x1c5   :  { %v224_v44 = vpop.f32.mrb[1].mxu1  ;;  %v233_v45 = vadd.f32 %v343_v43, %v167_v41 }
 0x1c6   :  { %v225_v46 = vadd.f32 %v224_v44, %v157_v39  ;;  %v344_v47 = vpop.f32.mrb[2].mxu1 }
 0x1c7   :  { %v227_v49 = vpop.f32.mrb[3].mxu1  ;;  %v236_v51 = vadd.f32 %v344_v47, %v172_v42  ;;  %v241_v54 = vmax.f32 %v233_v45, 0.0 }
 0x1c8   :  { %v239_v50 = vmax.f32 %v225_v46, 0.0  ;;  %v228_v52 = vadd.f32 %v227_v49, %v162_v40 }
 0x1c9   :  { %v242_v57 = vmax.f32 %v236_v51, 0.0  ;;  %v269_v60 = vmul.f32 %v260_v59, %v241_v54 }
 0x1ca   :  { %v240_v55 = vmax.f32 %v228_v52, 0.0  ;;  %v267_v56 = vmul.f32 %v250_v48, %v239_v50 }
 0x1cb   :  { %v270_v63 = vmul.f32 %v265_v62, %v242_v57 }
 0x1cc   :  { %v268_v58 = vmul.f32 %v255_v53, %v240_v55 }
 0x1ce   :  { %v271_v61 = vadd.f32 %v268_v58, %v267_v56 }
 0x1d0   :  { %v272_v0 = vadd.f32 %v271_v61, %v269_v60 }
 0x1d2   :  { %v273_v2 = vadd.f32 %v272_v0, %v270_v63 }
 0x1d4   :  { %v274_v3 = vrot.slane %v273_v2, 4 }
 0x1d6   :  { %v275_v5 = vadd.f32 %v274_v3, %v273_v2 }
 0x1d8   :  { %v276_v6 = vrot.slane %v275_v5, 2 }
 0x1da   :  { %v277_v8 = vadd.f32 %v276_v6, %v275_v5 }
 0x1dc   :  { %v278_v10 = vrot.slane %v277_v8, 1 }
 0x1de   :  { %v279_v12 = vadd.f32 %v278_v10, %v277_v8 }
 0x1e0   :  { %v290_v13 = vadd.f32 %v289_v11, %v279_v12 }
 0x1e2   :  { %v291_v14 = vmul.f32 -0.020202707, %v290_v13 }
 0x1e4   :  { %v292_v15 = vmul.f32 1.442695, %v291_v14 }
 0x1e6   :  { %355 = vpow2.f32 %v292_v15 }
 0x1f0   :  { %v356_v16 = vpop.eup %355 }
 0x1f1   :  { %v294_v17 = vsub.f32 1.0, %v356_v16 }
 0x1f3   :  { %v295_v18 = vmul.f32 -50.0, %v294_v17 }
 0x1f5   :  { %296 = vst [vmem:[#allocation3] sm:$0x1] %v295_v18 }
 0x1f6   :  { %368 = shalt.err (!%p365_p4)
}
 0x1f7   :  { %s369_s13 = scalar_lea.hbm %s503_s7, 16 }
 0x1f8   :  { %p370_p5 = scmp.ne.s32.totalorder %s503_s7, %s369_s13  ;;  %p373_p6 = scmp.lt.u32.totalorder %s369_s13, %s503_s7 }
 0x1fa   :  { %p375_p7 = pnand %p373_p6, %p370_p5 }
 0x1fc   :  { %378 = shalt.err (!%p375_p7)
}
 0x1fd   :  { %306 = dma.vmem_to_hbm [thread:$0]  %s304_s9, 16, %s503_s7, [#allocation4]  }
 0x1fe   :  { %379 = dma.done.wait [#allocation4], 16  }
 0x1ff   :  { %380 = vsyncadd [#allocation4], 4294967280 }
 0x200   :  { %310 = vsyncpa [#allocation4], 1 }

</bundles_post_ra>
